<compile_context>
chip_gen: v6e
topology: v6e:2x2x1
jax: 0.10.0
libtpu: 0.0.40
codegen_flags: <defaults>
</compile_context>

<pallas_src>
import jax
import jax.numpy as jnp
from jax.experimental import pallas as pl
from jax.experimental.pallas import tpu as pltpu

# ---- scaled-down model constants (structure mirrors models.py) -------------
# Original sizes: IMAGE_FEATURES=2048, A_MID_FEATURES=512, HIDDEN_LSTM_SIZE=512.
A_MID_FEATURES   = 128
GLIMPSES         = 2
IMAGE_FEATURES   = 128
HIDDEN_LSTM_SIZE = 64
NUM_LSTM_LAYERS  = 2
TEXT_FEATURES    = NUM_LSTM_LAYERS * HIDDEN_LSTM_SIZE   # 128
# DROPOUT (p=0.5) -> identity at inference time.


# ---------------------------------------------------------------------------
# Fused AttentionModel kernel.
#   img_ref  : (N, C, HW)   channels-first, spatial on the lane axis
#   qstT_ref : (T, N)       question features, transposed (tiny)
#   wconv    : (A, C)       image_convolution weight (1x1 conv, no bias)
#   wq, bq   : (A, T), (A, 1)   question_linear weight / bias (column vector)
#   wres,bres: (G, A), (G, 1)   result_convolution weight / bias
#   out_ref  : (N, G, HW)
# ---------------------------------------------------------------------------
def attention_kernel(img_ref, qstT_ref, wconv_ref, wq_ref, bq_ref,
                     wres_ref, bres_ref, out_ref):
    # question_linear for the whole batch in one MXU matmul:
    #   qproj[:, n] = Wq @ qst[n] + bq            -> (A, N)
    qproj = (jnp.dot(wq_ref[...], qstT_ref[...],
                     preferred_element_type=jnp.float32) + bq_ref[...])

    n_batch = img_ref.shape[0]
    for n in range(n_batch):                      # static, fully unrolled
        img_n = img_ref[n]                        # (C, HW)
        # image_convolution: 1x1 conv == (A, C) x (C, HW) MXU matmul.
        mid = jnp.dot(wconv_ref[...], img_n,
                      preferred_element_type=jnp.float32)            # (A, HW)
        # tile_2d_over_nd + ReLU: lane-broadcast of the n-th qproj column.
        act = jnp.maximum(mid + qproj[:, n:n + 1], 0.0)              # (A, HW)
        # result_convolution: (G, A) x (A, HW) MXU matmul + bias.
        out_ref[n] = (jnp.dot(wres_ref[...], act,
                              preferred_element_type=jnp.float32)
                      + bres_ref[...])                               # (G, HW)


def attention_forward(img_nchw, qst, params):
    """img_nchw: (N, C, H, W), qst: (N, T) -> (N, GLIMPSES, H, W)."""
    N, C, H, W = img_nchw.shape
    HW = H * W
    img_ncs = img_nchw.reshape(N, C, HW)     # free reshape; NCHW layout kept
    qstT = qst.T                             # (T, N), tiny

    def vmem():
        return pl.BlockSpec(memory_space=pltpu.MemorySpace.VMEM)

    out = pl.pallas_call(
        attention_kernel,
        out_shape=jax.ShapeDtypeStruct((N, GLIMPSES, HW), jnp.float32),
        in_specs=[vmem() for _ in range(7)],
        out_specs=vmem(),
    )(img_ncs, qstT, params["wconv"], params["wq"], params["bq"],
      params["wres"], params["bres"])
    return out.reshape(N, GLIMPSES, H, W)


# ---------------------------------------------------------------------------
# Pure-JAX reference (mirrors the PyTorch forward exactly) for validation.
# ---------------------------------------------------------------------------
def attention_reference(img_nchw, qst, params):
    mid = jnp.einsum("ac,nchw->nahw", params["wconv"], img_nchw)
    qproj = qst @ params["wq"].T + params["bq"][:, 0]                # (N, A)
    act = jnp.maximum(mid + qproj[:, :, None, None], 0.0)            # tile + ReLU
    out = jnp.einsum("ga,nahw->nghw", params["wres"], act)
    return out + params["bres"][:, 0][None, :, None, None]


# ---------------------------------------------------------------------------
# Deterministic synthetic parameters (no checkpoint loading).
# ---------------------------------------------------------------------------
def init_params(key):
    A, C, T, G = A_MID_FEATURES, IMAGE_FEATURES, TEXT_FEATURES, GLIMPSES
    ks = jax.random.split(key, 5)
    s = 0.1
    return {
        # image_convolution.weight[:, :, 0, 0]  (1x1 conv, bias=False)
        "wconv": s * jax.random.normal(ks[0], (A, C), jnp.float32),
        # question_linear weight / bias (bias kept as a column vector so it
        # broadcasts over both batch and spatial lanes inside the kernel)
        "wq": s * jax.random.normal(ks[1], (A, T), jnp.float32),
        "bq": s * jax.random.normal(ks[2], (A, 1), jnp.float32),
        # result_convolution.weight[:, :, 0, 0] / bias
        "wres": s * jax.random.normal(ks[3], (G, A), jnp.float32),
        "bres": s * jax.random.normal(ks[4], (G, 1), jnp.float32),
    }


if __name__ == "__main__":
    key = jax.random.PRNGKey(0)
    k_img, k_qst, k_par = jax.random.split(key, 3)

    N, Hs, Ws = 2, 8, 16        # H*W = 128 -> lane-dense spatial axis
    img = jax.random.normal(k_img, (N, IMAGE_FEATURES, Hs, Ws), jnp.float32)
    qst = jax.random.normal(k_qst, (N, TEXT_FEATURES), jnp.float32)
    params = init_params(k_par)

    out = attention_forward(img, qst, params)
    out = jax.block_until_ready(out)

    ref = attention_reference(img, qst, params)
    assert out.shape == (N, GLIMPSES, Hs, Ws)
    assert bool(jnp.allclose(out, ref, rtol=2e-2, atol=2e-2)), (out, ref)
    print("KERNEL_OK")
</pallas_src>

<mosaic_0001>
module attributes {stable_mosaic.version = 11 : i64} {
  func.func @attention_kernel(%arg0: memref<2x128x128xf32, #tpu.memory_space<vmem>>, %arg1: memref<128x2xf32, #tpu.memory_space<vmem>>, %arg2: memref<128x128xf32, #tpu.memory_space<vmem>>, %arg3: memref<128x128xf32, #tpu.memory_space<vmem>>, %arg4: memref<128x1xf32, #tpu.memory_space<vmem>>, %arg5: memref<2x128xf32, #tpu.memory_space<vmem>>, %arg6: memref<2x1xf32, #tpu.memory_space<vmem>>, %arg7: memref<2x2x128xf32, #tpu.memory_space<vmem>>) attributes {dimension_semantics = [], scalar_prefetch = 0 : i64, scratch_operands = 0 : i64, tpu.core_type = #tpu.core_type<tc>} {
    %c0 = arith.constant 0 : index
    %c0_0 = arith.constant 0 : index
    %0 = vector.load %arg3[%c0, %c0_0] : memref<128x128xf32, #tpu.memory_space<vmem>>, vector<128x128xf32>
    %c0_1 = arith.constant 0 : index
    %c0_2 = arith.constant 0 : index
    %1 = vector.load %arg1[%c0_1, %c0_2] : memref<128x2xf32, #tpu.memory_space<vmem>>, vector<128x2xf32>
    %cst = arith.constant dense<0.000000e+00> : vector<128x2xf32>
    %2 = tpu.matmul %0, %1, %cst {dimension_numbers = #tpu.dot_dimension_numbers<[1], [0], [0], [1], [0, 0, 1, 1], [], []>} : vector<128x128xf32>, vector<128x2xf32>, vector<128x2xf32> -> vector<128x2xf32>
    %c0_3 = arith.constant 0 : index
    %c0_4 = arith.constant 0 : index
    %3 = vector.load %arg4[%c0_3, %c0_4] : memref<128x1xf32, #tpu.memory_space<vmem>>, vector<128x1xf32>
    %4 = vector.broadcast %3 : vector<128x1xf32> to vector<128x2xf32>
    %5 = arith.addf %2, %4 : vector<128x2xf32>
    %c0_5 = arith.constant 0 : index
    %c0_6 = arith.constant 0 : index
    %c0_7 = arith.constant 0 : index
    %6 = vector.load %arg0[%c0_5, %c0_6, %c0_7] : memref<2x128x128xf32, #tpu.memory_space<vmem>>, vector<1x128x128xf32>
    %7 = vector.shape_cast %6 : vector<1x128x128xf32> to vector<128x128xf32>
    %c0_8 = arith.constant 0 : index
    %c0_9 = arith.constant 0 : index
    %8 = vector.load %arg2[%c0_8, %c0_9] : memref<128x128xf32, #tpu.memory_space<vmem>>, vector<128x128xf32>
    %cst_10 = arith.constant dense<0.000000e+00> : vector<128x128xf32>
    %9 = tpu.matmul %8, %7, %cst_10 {dimension_numbers = #tpu.dot_dimension_numbers<[1], [0], [0], [1], [0, 0, 1, 1], [], []>} : vector<128x128xf32>, vector<128x128xf32>, vector<128x128xf32> -> vector<128x128xf32>
    %10 = vector.extract_strided_slice %5 {offsets = [0, 0], sizes = [128, 1], strides = [1, 1]} : vector<128x2xf32> to vector<128x1xf32>
    %11 = vector.broadcast %10 : vector<128x1xf32> to vector<128x128xf32>
    %12 = arith.addf %9, %11 : vector<128x128xf32>
    %cst_11 = arith.constant 0.000000e+00 : f32
    %13 = vector.broadcast %cst_11 : f32 to vector<128x128xf32>
    %14 = arith.maximumf %12, %13 : vector<128x128xf32>
    %c0_12 = arith.constant 0 : index
    %c0_13 = arith.constant 0 : index
    %15 = vector.load %arg5[%c0_12, %c0_13] : memref<2x128xf32, #tpu.memory_space<vmem>>, vector<2x128xf32>
    %cst_14 = arith.constant dense<0.000000e+00> : vector<2x128xf32>
    %16 = tpu.matmul %15, %14, %cst_14 {dimension_numbers = #tpu.dot_dimension_numbers<[1], [0], [0], [1], [0, 0, 1, 1], [], []>} : vector<2x128xf32>, vector<128x128xf32>, vector<2x128xf32> -> vector<2x128xf32>
    %c0_15 = arith.constant 0 : index
    %c0_16 = arith.constant 0 : index
    %17 = vector.load %arg6[%c0_15, %c0_16] : memref<2x1xf32, #tpu.memory_space<vmem>>, vector<2x1xf32>
    %18 = vector.broadcast %17 : vector<2x1xf32> to vector<2x128xf32>
    %19 = arith.addf %16, %18 : vector<2x128xf32>
    %c0_17 = arith.constant 0 : index
    %c0_18 = arith.constant 0 : index
    %c0_19 = arith.constant 0 : index
    %20 = vector.load %arg7[%c0_17, %c0_18, %c0_19] : memref<2x2x128xf32, #tpu.memory_space<vmem>>, vector<1x2x128xf32>
    %21 = vector.shape_cast %20 : vector<1x2x128xf32> to vector<2x128xf32>
    %22 = vector.shape_cast %19 : vector<2x128xf32> to vector<1x2x128xf32>
    tpu.vector_store %arg7[%c0_17, %c0_18, %c0_19], %22 {strides = array<i32>} : memref<2x2x128xf32, #tpu.memory_space<vmem>>, vector<1x2x128xf32>,
    %c1 = arith.constant 1 : index
    %c0_20 = arith.constant 0 : index
    %c0_21 = arith.constant 0 : index
    %23 = vector.load %arg0[%c1, %c0_20, %c0_21] : memref<2x128x128xf32, #tpu.memory_space<vmem>>, vector<1x128x128xf32>
    %24 = vector.shape_cast %23 : vector<1x128x128xf32> to vector<128x128xf32>
    %c0_22 = arith.constant 0 : index
    %c0_23 = arith.constant 0 : index
    %25 = vector.load %arg2[%c0_22, %c0_23] : memref<128x128xf32, #tpu.memory_space<vmem>>, vector<128x128xf32>
    %cst_24 = arith.constant dense<0.000000e+00> : vector<128x128xf32>
    %26 = tpu.matmul %25, %24, %cst_24 {dimension_numbers = #tpu.dot_dimension_numbers<[1], [0], [0], [1], [0, 0, 1, 1], [], []>} : vector<128x128xf32>, vector<128x128xf32>, vector<128x128xf32> -> vector<128x128xf32>
    %27 = vector.extract_strided_slice %5 {offsets = [0, 1], sizes = [128, 1], strides = [1, 1]} : vector<128x2xf32> to vector<128x1xf32>
    %28 = vector.broadcast %27 : vector<128x1xf32> to vector<128x128xf32>
    %29 = arith.addf %26, %28 : vector<128x128xf32>
    %cst_25 = arith.constant 0.000000e+00 : f32
    %30 = vector.broadcast %cst_25 : f32 to vector<128x128xf32>
    %31 = arith.maximumf %29, %30 : vector<128x128xf32>
    %c0_26 = arith.constant 0 : index
    %c0_27 = arith.constant 0 : index
    %32 = vector.load %arg5[%c0_26, %c0_27] : memref<2x128xf32, #tpu.memory_space<vmem>>, vector<2x128xf32>
    %cst_28 = arith.constant dense<0.000000e+00> : vector<2x128xf32>
    %33 = tpu.matmul %32, %31, %cst_28 {dimension_numbers = #tpu.dot_dimension_numbers<[1], [0], [0], [1], [0, 0, 1, 1], [], []>} : vector<2x128xf32>, vector<128x128xf32>, vector<2x128xf32> -> vector<2x128xf32>
    %c0_29 = arith.constant 0 : index
    %c0_30 = arith.constant 0 : index
    %34 = vector.load %arg6[%c0_29, %c0_30] : memref<2x1xf32, #tpu.memory_space<vmem>>, vector<2x1xf32>
    %35 = vector.broadcast %34 : vector<2x1xf32> to vector<2x128xf32>
    %36 = arith.addf %33, %35 : vector<2x128xf32>
    %c1_31 = arith.constant 1 : index
    %c0_32 = arith.constant 0 : index
    %c0_33 = arith.constant 0 : index
    %37 = vector.load %arg7[%c1_31, %c0_32, %c0_33] : memref<2x2x128xf32, #tpu.memory_space<vmem>>, vector<1x2x128xf32>
    %38 = vector.shape_cast %37 : vector<1x2x128xf32> to vector<2x128xf32>
    %39 = vector.shape_cast %36 : vector<2x128xf32> to vector<1x2x128xf32>
    tpu.vector_store %arg7[%c1_31, %c0_32, %c0_33], %39 {strides = array<i32>} : memref<2x2x128xf32, #tpu.memory_space<vmem>>, vector<1x2x128xf32>,
    return
  }
}

</mosaic_0001>

<bundles_post_ra>
// kernel: tpu_custom_call.1
= control target key start
LH: loop header
LB: loop body
LE: loop exit
PB: predicated region body
PF: predicated region fallthrough
CT: control target
= control target key end

     0   :  { %12 = vsyncpa [#allocation3], 0  ;;  %s1892_s0 = inlined_call_operand.vmem [shape: f32[2,128,128], index: 0, kind: input, shape index: {}]   ;;  %s1893_s1 = inlined_call_operand.vmem [shape: f32[128,2], index: 1, kind: input, shape index: {}]   ;;  %s1894_s2 = inlined_call_operand.hbm [shape: f32[128,128], index: 2, kind: input, shape index: {}]   ;;  %s1895_s3 = inlined_call_operand.hbm [shape: f32[128,128], index: 3, kind: input, shape index: {}]   ;;  %s1896_s4 = inlined_call_operand.vmem [shape: f32[128,1], index: 4, kind: input, shape index: {}]   ;;  %s1897_s5 = inlined_call_operand.vmem [shape: f32[2,128], index: 5, kind: input, shape index: {}]   ;;  %s1898_s6 = inlined_call_operand.vmem [shape: f32[2,1], index: 6, kind: input, shape index: {}]   ;;  %s1899_s7 = inlined_call_operand.hbm [shape: f32[2,2,128], index: 7, kind: output, shape index: {}]  }
   0x1   :  { %13 = vsyncpa [#allocation6], 0 }
   0x2   :  { %14 = vsyncpa [#allocation4], 0  ;;  %s1501_s24 = smov [#allocation2]  }
   0x3   :  { %s24_s25 = sshll.u32 %s1501_s24, 4  ;;  %s25_s25 = int_to_ptr.vmem [resolvable:$true] %s24_s25 }
   0x4   :  { %s1443_s26 = scalar_lea.vmem %s25_s25, 2048  ;;  %p1448_p1 = scmp.lt.s32.totalorder %s25_s25, %s25_s25 }
   0x5   :  { %p1444_p0 = scmp.ne.s32.totalorder %s25_s25, %s1443_s26  ;;  %p1449_p2 = scmp.lt.s32.totalorder %s1443_s26, %s1443_s26 }
   0x7   :  { %p1450_p3 = por %p1449_p2, %p1448_p1 }
   0x9   :  { %p1451_p4 = pnand %p1450_p3, %p1444_p0 }
   0xb   :  { %1454 = shalt.err (!%p1451_p4)
}
   0xc   :  { %s1502_s27 = smov 128   ;;  %s1503_s28 = smov 8  }
   0xd   :  { %30 = dma.hbm_to_vmem [thread:$0]  %s1894_s2, 2048, %s25_s25, [#allocation3], %s1502_s27, %s1502_s27, %s1503_s28  }
   0xe   :  { %s1504_s8 = smov [#allocation5]  }
   0xf   :  { %s36_s9 = sshll.u32 %s1504_s8, 4  ;;  %s37_s9 = int_to_ptr.vmem [resolvable:$true] %s36_s9 }
  0x10   :  { %s1463_s10 = scalar_lea.vmem %s37_s9, 2048  ;;  %p1468_p6 = scmp.lt.s32.totalorder %s37_s9, %s37_s9 }
  0x11   :  { %p1464_p5 = scmp.ne.s32.totalorder %s37_s9, %s1463_s10  ;;  %p1469_p7 = scmp.lt.s32.totalorder %s1463_s10, %s1463_s10 }
  0x13   :  { %p1470_p8 = por %p1469_p7, %p1468_p6 }
  0x15   :  { %p1471_p9 = pnand %p1470_p8, %p1464_p5 }
  0x17   :  { %1474 = shalt.err (!%p1471_p9)
}
  0x18   :  { %42 = dma.hbm_to_vmem [thread:$0]  %s1895_s3, 2048, %s37_s9, [#allocation6], %s1502_s27, %s1502_s27, %s1503_s28  }
  0x19   :  { %1495 = dma.done.wait [#allocation3], 2048  }
  0x1a   :  { %1496 = vsyncadd [#allocation3], 4294965248 }
  0x1b   :  { %1497 = dma.done.wait [#allocation6], 2048  }
  0x1c   :  { %1498 = vsyncadd [#allocation6], 4294965248  ;;  %v1505_v0 = vmov 0   ;;  %v86_v1 = vld [vmem:[%s1893_s1 + $0x78] sm:$0xff]  ;;  %v85_v2 = vld [vmem:[%s1893_s1 + $0x70] sm:$0xff]  ;;  %vm1508_vm0 = vmmov 0  }
  0x1d   :  { %1429 = vset.pattern.permute.xlu0 %v1505_v0  ;;  %1430 = vset.pattern.permute.xlu1 %v1505_v0  ;;  %v84_v3 = vld [vmem:[%s1893_s1 + $0x68] sm:$0xff]  ;;  %v83_v4 = vld [vmem:[%s1893_s1 + $0x60] sm:$0xff]  ;;  %v82_v6 = vld [vmem:[%s1893_s1 + $0x58] sm:$0xff]  ;;  %s1509_s3 = smov [#allocation7]  }
  0x1e   :  { %1180 = vmatprep.subr.mxu0 %v86_v1  ;;  %v55_v5 = vld [vmem:[#allocation5] sm:$0xff]  ;;  %v81_v7 = vld [vmem:[%s1893_s1 + $0x50] sm:$0xff]  ;;  %v80_v8 = vld [vmem:[%s1893_s1 + $0x48] sm:$0xff]  ;;  %s1021_s16 = sshll.u32 %s1509_s3, 4  ;;  %s1022_s16 = int_to_ptr.vmem [resolvable:$true] %s1021_s16 }
  0x1f   :  { %1181 = vmatpush3.msra.mxu0 %v86_v1  ;;  %1212 = vmatprep.mubr.f32.mxu0 %v55_v5  ;;  %v102_v9 = vld [vmem:[%s1896_s4 + $0x78] sm:$0xff]  ;;  %v100_v10 = vld [vmem:[%s1896_s4 + $0x68] sm:$0xff]  ;;  %v79_v11 = vld [vmem:[%s1893_s1 + $0x40] sm:$0xff]  ;;  %s1475_s17 = scalar_lea.vmem %s1022_s16, 64  ;;  %p1480_p11 = scmp.lt.s32.totalorder %s1022_s16, %s1022_s16 }
  0x20   :  { %1182 = vmatprep.subr.mxu0 %v85_v2  ;;  %180 = vperm.xlu0 %1429, %v102_v9   ;;  %v101_v12 = vld [vmem:[%s1896_s4 + $0x70] sm:$0xff]  ;;  %v99_v13 = vld [vmem:[%s1896_s4 + $0x60] sm:$0xff]  ;;  %v78_v14 = vld [vmem:[%s1893_s1 + $0x38] sm:$0xff]  ;;  %p1476_p10 = scmp.ne.s32.totalorder %s1022_s16, %s1475_s17  ;;  %p1481_p12 = scmp.lt.s32.totalorder %s1475_s17, %s1475_s17 }
  0x21   :  { %1183 = vmatpush3.msra.mxu0 %v85_v2  ;;  %170 = vperm.xlu1 %1430, %v100_v10   ;;  %v77_v15 = vld [vmem:[%s1893_s1 + $0x30] sm:$0xff]  ;;  %v98_v16 = vld [vmem:[%s1896_s4 + $0x58] sm:$0xff]  ;;  %v76_v19 = vld [vmem:[%s1893_s1 + $0x28] sm:$0xff] }
  0x22   :  { %1184 = vmatprep.subr.mxu0 %v84_v3  ;;  %v343_v17 = vld [vmem:[%s1892_s0 + $0x78] sm:$0xff]  ;;  %v97_v18 = vld [vmem:[%s1896_s4 + $0x50] sm:$0xff]  ;;  %v75_v21 = vld [vmem:[%s1893_s1 + $0x20] sm:$0xff]  ;;  %p1482_p13 = por %p1481_p12, %p1480_p11 }
  0x23   :  { %1185 = vmatpush3.msra.mxu0 %v84_v3  ;;  %1236 = vmatprep.subr.mxu1 %v343_v17  ;;  %v342_v20 = vld [vmem:[%s1892_s0 + $0x70] sm:$0xff]  ;;  %v96_v22 = vld [vmem:[%s1896_s4 + $0x48] sm:$0xff]  ;;  %v95_v23 = vld [vmem:[%s1896_s4 + $0x40] sm:$0xff] }
  0x24   :  { %1186 = vmatprep.subr.mxu0 %v83_v4  ;;  %175 = vperm.xlu0 %1429, %v101_v12   ;;  %v74_v24 = vld [vmem:[%s1893_s1 + $0x18] sm:$0xff]  ;;  %v341_v25 = vld [vmem:[%s1892_s0 + $0x68] sm:$0xff]  ;;  %v73_v26 = vld [vmem:[%s1893_s1 + $0x10] sm:$0xff]  ;;  %p1483_p0 = pnand %p1482_p13, %p1476_p10 }
  0x25   :  { %1187 = vmatpush3.msra.mxu0 %v83_v4  ;;  %165 = vperm.xlu1 %1430, %v99_v13   ;;  %v94_v27 = vld [vmem:[%s1896_s4 + $0x38] sm:$0xff]  ;;  %v93_v28 = vld [vmem:[%s1896_s4 + $0x30] sm:$0xff]  ;;  %v72_v29 = vld [vmem:[%s1893_s1 + $0x8] sm:$0xff] }
  0x26   :  { %1188 = vmatprep.subr.mxu0 %v82_v6  ;;  %1237 = vmatpush3.msra.mxu1 %v343_v17  ;;  %v340_v30 = vld [vmem:[%s1892_s0 + $0x60] sm:$0xff]  ;;  %v92_v32 = vld [vmem:[%s1896_s4 + $0x28] sm:$0xff]  ;;  %v339_v35 = vld [vmem:[%s1892_s0 + $0x58] sm:$0xff] }
  0x27   :  { %1189 = vmatpush3.msra.mxu0 %v82_v6  ;;  %1238 = vmatprep.subr.mxu1 %v342_v20  ;;  %v71_v31 = vld [vmem:[%s1893_s1] sm:$0xff]  ;;  %v56_v34 = vld [vmem:[#allocation5 + $0x8] sm:$0xff]  ;;  %v57_v36 = vld [vmem:[#allocation5 + $0x10] sm:$0xff] }
  0x28   :  { %1190 = vmatprep.subr.mxu0 %v81_v7  ;;  %160 = vperm.xlu0 %1429, %v98_v16   ;;  %v91_v33 = vld [vmem:[%s1896_s4 + $0x20] sm:$0xff]  ;;  %v90_v37 = vld [vmem:[%s1896_s4 + $0x18] sm:$0xff]  ;;  %v338_v38 = vld [vmem:[%s1892_s0 + $0x50] sm:$0xff] }
  0x29   :  { %1191 = vmatpush3.msra.mxu0 %v81_v7  ;;  %155 = vperm.xlu1 %1430, %v97_v18   ;;  %v89_v39 = vld [vmem:[%s1896_s4 + $0x10] sm:$0xff]  ;;  %v58_v40 = vld [vmem:[#allocation5 + $0x18] sm:$0xff]  ;;  %v337_v41 = vld [vmem:[%s1892_s0 + $0x48] sm:$0xff] }
  0x2a   :  { %1192 = vmatprep.subr.mxu0 %v80_v8  ;;  %1239 = vmatpush3.msra.mxu1 %v342_v20  ;;  %v59_v42 = vld [vmem:[#allocation5 + $0x20] sm:$0xff]  ;;  %v88_v43 = vld [vmem:[%s1896_s4 + $0x8] sm:$0xff]  ;;  %v335_v47 = vld [vmem:[%s1892_s0 + $0x38] sm:$0xff] }
  0x2b   :  { %1193 = vmatpush3.msra.mxu0 %v80_v8  ;;  %1240 = vmatprep.subr.mxu1 %v341_v25  ;;  %v336_v44 = vld [vmem:[%s1892_s0 + $0x40] sm:$0xff]  ;;  %v60_v46 = vld [vmem:[#allocation5 + $0x28] sm:$0xff]  ;;  %v61_v48 = vld [vmem:[#allocation5 + $0x30] sm:$0xff] }
  0x2c   :  { %1194 = vmatprep.subr.mxu0 %v79_v11  ;;  %150 = vperm.xlu0 %1429, %v96_v22   ;;  %v87_v45 = vld [vmem:[%s1896_s4] sm:$0xff]  ;;  %v334_v49 = vld [vmem:[%s1892_s0 + $0x30] sm:$0xff]  ;;  %v62_v51 = vld [vmem:[#allocation5 + $0x38] sm:$0xff] }
  0x2d   :  { %1195 = vmatpush3.msra.mxu0 %v79_v11  ;;  %145 = vperm.xlu1 %1430, %v95_v23   ;;  %v1686_v50 = vld [vmem:[#allocation2] sm:$0xff]  ;;  %v333_v52 = vld [vmem:[%s1892_s0 + $0x28] sm:$0xff]  ;;  %v331_v56 = vld [vmem:[%s1892_s0 + $0x18] sm:$0xff] }
  0x2e   :  { %1196 = vmatprep.subr.mxu0 %v78_v14  ;;  %1241 = vmatpush3.msra.mxu1 %v341_v25  ;;  %v63_v53 = vld [vmem:[#allocation5 + $0x40] sm:$0xff]  ;;  %v64_v55 = vld [vmem:[#allocation5 + $0x48] sm:$0xff]  ;;  %v65_v57 = vld [vmem:[#allocation5 + $0x50] sm:$0xff] }
  0x2f   :  { %1197 = vmatpush3.msra.mxu0 %v78_v14  ;;  %1242 = vmatprep.subr.mxu1 %v340_v30  ;;  %v332_v54 = vld [vmem:[%s1892_s0 + $0x20] sm:$0xff]  ;;  %v330_v58 = vld [vmem:[%s1892_s0 + $0x10] sm:$0xff]  ;;  %v66_v59 = vld [vmem:[#allocation5 + $0x58] sm:$0xff] }
  0x30   :  { %1198 = vmatprep.subr.mxu0 %v77_v15  ;;  %140 = vperm.xlu0 %1429, %v94_v27   ;;  %v329_v60 = vld [vmem:[%s1892_s0 + $0x8] sm:$0xff]  ;;  %v67_v61 = vld [vmem:[#allocation5 + $0x60] sm:$0xff]  ;;  %v69_v2 = vld [vmem:[#allocation5 + $0x70] sm:$0xff] }
  0x31   :  { %1199 = vmatpush3.msra.mxu0 %v77_v15  ;;  %135 = vperm.xlu1 %1430, %v93_v28   ;;  %v328_v62 = vld [vmem:[%s1892_s0] sm:$0xff]  ;;  %v68_v63 = vld [vmem:[#allocation5 + $0x68] sm:$0xff]  ;;  %v1049_v3 = vld [vmem:[%s1892_s0 + $0xf8] sm:$0xff] }
  0x32   :  { %1200 = vmatprep.subr.mxu0 %v76_v19  ;;  %1243 = vmatpush3.msra.mxu1 %v340_v30  ;;  %v1707_v1 = vld [vmem:[#allocation2 + $0x8] sm:$0xff]  ;;  %v1712_v4 = vld [vmem:[#allocation2 + $0x10] sm:$0xff]  ;;  %v70_v6 = vld [vmem:[#allocation5 + $0x78] sm:$0xff] }
  0x33   :  { %1201 = vmatpush3.msra.mxu0 %v76_v19  ;;  %1244 = vmatprep.subr.mxu1 %v339_v35  ;;  %v1048_v5 = vld [vmem:[%s1892_s0 + $0xf0] sm:$0xff]  ;;  %v1719_v7 = vld [vmem:[#allocation2 + $0x18] sm:$0xff]  ;;  %v1047_v8 = vld [vmem:[%s1892_s0 + $0xe8] sm:$0xff] }
  0x34   :  { %1202 = vmatprep.subr.mxu0 %v75_v21  ;;  %130 = vperm.xlu0 %1429, %v92_v32   ;;  %v1724_v9 = vld [vmem:[#allocation2 + $0x20] sm:$0xff]  ;;  %v1731_v11 = vld [vmem:[#allocation2 + $0x28] sm:$0xff]  ;;  %v1045_v12 = vld [vmem:[%s1892_s0 + $0xd8] sm:$0xff] }
  0x35   :  { %1203 = vmatpush3.msra.mxu0 %v75_v21  ;;  %125 = vperm.xlu1 %1430, %v91_v33   ;;  %v1046_v10 = vld [vmem:[%s1892_s0 + $0xe0] sm:$0xff]  ;;  %v350_v13 = vld [vmem:[#allocation2 + $0x30] sm:$0xff]  ;;  %v351_v15 = vld [vmem:[#allocation2 + $0x38] sm:$0xff] }
  0x36   :  { %1204 = vmatprep.subr.mxu0 %v74_v24  ;;  %1245 = vmatpush3.msra.mxu1 %v339_v35  ;;  %v1044_v14 = vld [vmem:[%s1892_s0 + $0xd0] sm:$0xff]  ;;  %v1043_v16 = vld [vmem:[%s1892_s0 + $0xc8] sm:$0xff]  ;;  %v352_v17 = vld [vmem:[#allocation2 + $0x40] sm:$0xff] }
  0x37   :  { %1205 = vmatpush3.msra.mxu0 %v74_v24  ;;  %1246 = vmatprep.subr.mxu1 %v338_v38  ;;  %v1042_v18 = vld [vmem:[%s1892_s0 + $0xc0] sm:$0xff]  ;;  %v353_v19 = vld [vmem:[#allocation2 + $0x48] sm:$0xff]  ;;  %v1041_v20 = vld [vmem:[%s1892_s0 + $0xb8] sm:$0xff] }
  0x38   :  { %1206 = vmatprep.subr.mxu0 %v73_v26  ;;  %120 = vperm.xlu0 %1429, %v90_v37   ;;  %v354_v21 = vld [vmem:[#allocation2 + $0x50] sm:$0xff]  ;;  %v355_v23 = vld [vmem:[#allocation2 + $0x58] sm:$0xff]  ;;  %v1039_v24 = vld [vmem:[%s1892_s0 + $0xa8] sm:$0xff] }
  0x39   :  { %1207 = vmatpush3.msra.mxu0 %v73_v26  ;;  %115 = vperm.xlu1 %1430, %v89_v39   ;;  %v1040_v22 = vld [vmem:[%s1892_s0 + $0xb0] sm:$0xff]  ;;  %v356_v25 = vld [vmem:[#allocation2 + $0x60] sm:$0xff]  ;;  %v357_v27 = vld [vmem:[#allocation2 + $0x68] sm:$0xff] }
  0x3a   :  { %1208 = vmatprep.subr.mxu0 %v72_v29  ;;  %1247 = vmatpush3.msra.mxu1 %v338_v38  ;;  %v1038_v26 = vld [vmem:[%s1892_s0 + $0xa0] sm:$0xff]  ;;  %v1037_v28 = vld [vmem:[%s1892_s0 + $0x98] sm:$0xff]  ;;  %v1036_v30 = vld [vmem:[%s1892_s0 + $0x90] sm:$0xff] }
  0x3b   :  { %1209 = vmatpush3.msra.mxu0 %v72_v29  ;;  %1248 = vmatprep.subr.mxu1 %v337_v41  ;;  %v358_v29 = vld [vmem:[#allocation2 + $0x70] sm:$0xff]  ;;  %v1035_v32 = vld [vmem:[%s1892_s0 + $0x88] sm:$0xff]  ;;  %v1034_v33 = vld [vmem:[%s1892_s0 + $0x80] sm:$0xff] }
  0x3c   :  { %1210 = vmatprep.subr.mxu0 %v71_v31  ;;  %1249 = vmatpush3.msra.mxu1 %v337_v41 }
  0x3d   :  { %1211 = vmatpush3.msra.mxu0 %v71_v31  ;;  %110 = vperm.xlu0 %1429, %v88_v43   ;;  %v359_v31 = vld [vmem:[#allocation2 + $0x78] sm:$0xff] }
  0x3e   :  { %1213 = vmatmul.mubr.f32.vlgmr.msra.gmra.mxu0 %v56_v34  ;;  %1250 = vmatprep.subr.mxu1 %v336_v44 }
  0x3f   :  { %1215 = vmatprep.mubr.f32.mxu0 %v57_v36  ;;  %105 = vperm.xlu1 %1430, %v87_v45  }
  0x40   :  { %1251 = vmatpush3.msra.mxu1 %v336_v44  ;;  %1268 = vmatprep.mubr.f32.mxu1 %v1686_v50 }
  0x41   :  { %1252 = vmatprep.subr.mxu1 %v335_v47 }
  0x42   :  { %1216 = vmatmul.mubr.f32.gmra.mxu0 %v58_v40  ;;  %1253 = vmatpush3.msra.mxu1 %v335_v47 }
  0x43   :  { %1218 = vmatprep.mubr.f32.mxu0 %v59_v42  ;;  %1254 = vmatprep.subr.mxu1 %v334_v49 }
  0x44   :  { %1255 = vmatpush3.msra.mxu1 %v334_v49 }
  0x45   :  { %1256 = vmatprep.subr.mxu1 %v333_v52 }
  0x46   :  { %1219 = vmatmul.mubr.f32.gmra.mxu0 %v60_v46  ;;  %1257 = vmatpush3.msra.mxu1 %v333_v52 }
  0x47   :  { %1221 = vmatprep.mubr.f32.mxu0 %v61_v48  ;;  %1258 = vmatprep.subr.mxu1 %v332_v54 }
  0x48   :  { %1259 = vmatpush3.msra.mxu1 %v332_v54 }
  0x49   :  { %1260 = vmatprep.subr.mxu1 %v331_v56 }
  0x4a   :  { %1222 = vmatmul.mubr.f32.gmra.mxu0 %v62_v51  ;;  %1261 = vmatpush3.msra.mxu1 %v331_v56 }
  0x4b   :  { %1224 = vmatprep.mubr.f32.mxu0 %v63_v53  ;;  %1262 = vmatprep.subr.mxu1 %v330_v58 }
  0x4c   :  { %1263 = vmatpush3.msra.mxu1 %v330_v58 }
  0x4d   :  { %1264 = vmatprep.subr.mxu1 %v329_v60 }
  0x4e   :  { %1225 = vmatmul.mubr.f32.gmra.mxu0 %v64_v55  ;;  %1265 = vmatpush3.msra.mxu1 %v329_v60 }
  0x4f   :  { %1227 = vmatprep.mubr.f32.mxu0 %v65_v57  ;;  %1266 = vmatprep.subr.mxu1 %v328_v62 }
  0x50   :  { %1267 = vmatpush3.msra.mxu1 %v328_v62 }
  0x51   :  { %1269 = vmatmul.mubr.f32.vlgmr.msra.gmra.mxu1 %v1707_v1  ;;  %1327 = vmatprep.subr.mxu1 %v1049_v3 }
  0x52   :  { %1228 = vmatmul.mubr.f32.gmra.mxu0 %v66_v59  ;;  %1328 = vmatpush3.msra.mxu1 %v1049_v3  ;;  %v1506_v59 = vmov 0.0  }
  0x53   :  { %1230 = vmatprep.mubr.f32.mxu0 %v67_v61  ;;  %1271 = vmatprep.mubr.f32.mxu1 %v1712_v4 }
  0x54   :  { %1329 = vmatprep.subr.mxu1 %v1048_v5  ;;  %1292 = vmatprep.subr.mxu0 %v1506_v59 }
  0x55   :  { %1330 = vmatpush3.msra.mxu1 %v1048_v5 }
  0x56   :  { %1231 = vmatmul.mubr.f32.gmra.mxu0 %v68_v63  ;;  %1272 = vmatmul.mubr.f32.gmra.mxu1 %v1719_v7 }
  0x57   :  { %1233 = vmatprep.mubr.f32.mxu0 %v69_v2  ;;  %1331 = vmatprep.subr.mxu1 %v1047_v8 }
  0x58   :  { %1332 = vmatpush3.msra.mxu1 %v1047_v8  ;;  %1274 = vmatprep.mubr.f32.mxu1 %v1724_v9 }
  0x59   :  { %1333 = vmatprep.subr.mxu1 %v1046_v10 }
  0x5a   :  { %1234 = vmatmul.mubr.f32.gmra.mxu0 %v70_v6  ;;  %1334 = vmatpush3.msra.mxu1 %v1046_v10 }
  0x5b   :  { %1275 = vmatmul.mubr.f32.gmra.mxu1 %v1731_v11  ;;  %1335 = vmatprep.subr.mxu1 %v1045_v12 }
  0x5c   :  { %1336 = vmatpush3.msra.mxu1 %v1045_v12  ;;  %1277 = vmatprep.mubr.f32.mxu1 %v350_v13 }
  0x5d   :  { %1337 = vmatprep.subr.mxu1 %v1044_v14  ;;  %1324 = vmatprep.mubr.msk.f32.mxu0 %vm1508_vm0, %v1506_v59 }
  0x5e   :  { %1338 = vmatpush3.msra.mxu1 %v1044_v14 }
  0x5f   :  { %1278 = vmatmul.mubr.f32.gmra.mxu1 %v351_v15  ;;  %1339 = vmatprep.subr.mxu1 %v1043_v16 }
  0x60   :  { %1340 = vmatpush3.msra.mxu1 %v1043_v16  ;;  %1280 = vmatprep.mubr.f32.mxu1 %v352_v17 }
  0x61   :  { %1341 = vmatprep.subr.mxu1 %v1042_v18 }
  0x62   :  { %1342 = vmatpush3.msra.mxu1 %v1042_v18 }
  0x63   :  { %1281 = vmatmul.mubr.f32.gmra.mxu1 %v353_v19  ;;  %1343 = vmatprep.subr.mxu1 %v1041_v20 }
  0x64   :  { %1344 = vmatpush3.msra.mxu1 %v1041_v20  ;;  %1283 = vmatprep.mubr.f32.mxu1 %v354_v21  ;;  %v1507_v20 = vmov 1  }
  0x65   :  { %1345 = vmatprep.subr.mxu1 %v1040_v22 }
  0x66   :  { %1346 = vmatpush3.msra.mxu1 %v1040_v22 }
  0x67   :  { %1284 = vmatmul.mubr.f32.gmra.mxu1 %v355_v23  ;;  %1347 = vmatprep.subr.mxu1 %v1039_v24 }
  0x68   :  { %1348 = vmatpush3.msra.mxu1 %v1039_v24  ;;  %1286 = vmatprep.mubr.f32.mxu1 %v356_v25 }
  0x69   :  { %1349 = vmatprep.subr.mxu1 %v1038_v26 }
  0x6a   :  { %1350 = vmatpush3.msra.mxu1 %v1038_v26 }
  0x6b   :  { %1287 = vmatmul.mubr.f32.gmra.mxu1 %v357_v27  ;;  %1351 = vmatprep.subr.mxu1 %v1037_v28 }
  0x6c   :  { %1352 = vmatpush3.msra.mxu1 %v1037_v28  ;;  %1289 = vmatprep.mubr.f32.mxu1 %v358_v29 }
  0x6d   :  { %1353 = vmatprep.subr.mxu1 %v1036_v30 }
  0x6e   :  { %1354 = vmatpush3.msra.mxu1 %v1036_v30  ;;  %v602_v30 = vld [vmem:[%s1898_s6] sm:$0x3] }
  0x6f   :  { %1290 = vmatmul.mubr.f32.gmra.mxu1 %v359_v31  ;;  %1355 = vmatprep.subr.mxu1 %v1035_v32 }
  0x70   :  { %1356 = vmatpush3.msra.mxu1 %v1035_v32  ;;  %1359 = vmatprep.mubr.f32.mxu1 %v1686_v50 }
  0x71   :  { %1357 = vmatprep.subr.mxu1 %v1034_v33 }
  0x72   :  { %1358 = vmatpush3.msra.mxu1 %v1034_v33 }
  0x73   :  { %1360 = vmatmul.mubr.f32.vlgmr.msra.gmra.mxu1 %v1707_v1 }
  0x74   :  { %1362 = vmatprep.mubr.f32.mxu1 %v1712_v4 }
  0x77   :  { %1363 = vmatmul.mubr.f32.gmra.mxu1 %v1719_v7 }
  0x78   :  { %1365 = vmatprep.mubr.f32.mxu1 %v1724_v9 }
  0x7b   :  { %1366 = vmatmul.mubr.f32.gmra.mxu1 %v1731_v11 }
  0x7c   :  { %1368 = vmatprep.mubr.f32.mxu1 %v350_v13 }
  0x7f   :  { %1369 = vmatmul.mubr.f32.gmra.mxu1 %v351_v15 }
  0x80   :  { %1371 = vmatprep.mubr.f32.mxu1 %v352_v17 }
  0x83   :  { %1372 = vmatmul.mubr.f32.gmra.mxu1 %v353_v19 }
  0x84   :  { %1374 = vmatprep.mubr.f32.mxu1 %v354_v21 }
  0x87   :  { %1375 = vmatmul.mubr.f32.gmra.mxu1 %v355_v23 }
  0x88   :  { %1377 = vmatprep.mubr.f32.mxu1 %v356_v25 }
  0x8b   :  { %1378 = vmatmul.mubr.f32.gmra.mxu1 %v357_v27 }
  0x8c   :  { %1380 = vmatprep.mubr.f32.mxu1 %v358_v29 }
  0x8f   :  { %1381 = vmatmul.mubr.f32.gmra.mxu1 %v359_v31  ;;  %v938_v31 = vld [vmem:[%s1898_s6] sm:$0x3] }
  0x9b   :  { %v181_v38 = vpop.permute.xlu0 %180 }
  0x9c   :  { %v171_v42 = vpop.permute.xlu1 %170 }
  0x9f   :  { %v176_v43 = vpop.permute.xlu0 %175 }
  0xa0   :  { %v166_v47 = vpop.permute.xlu1 %165 }
  0xa3   :  { %v161_v48 = vpop.permute.xlu0 %160 }
  0xa4   :  { %v156_v52 = vpop.permute.xlu1 %155 }
  0xa7   :  { %v151_v54 = vpop.permute.xlu0 %150 }
  0xa8   :  { %v146_v61 = vpop.permute.xlu1 %145 }
  0xab   :  { %v141_v62 = vpop.permute.xlu0 %140 }
  0xac   :  { %v136_v3 = vpop.permute.xlu1 %135 }
  0xaf   :  { %v131_v4 = vpop.permute.xlu0 %130 }
  0xb0   :  { %v126_v8 = vpop.permute.xlu1 %125 }
  0xb3   :  { %v121_v9 = vpop.permute.xlu0 %120 }
  0xb4   :  { %v116_v13 = vpop.permute.xlu1 %115 }
  0xb8   :  { %v111_v14 = vpop.permute.xlu0 %110 }
  0xba   :  { %v106_v18 = vpop.permute.xlu1 %105 }
  0xfe   :  { %v1214_v34 = vpop.f32.mrf.mxu0 }
  0xff   :  { %v255_v16 = vadd.f32 %v1214_v34, %v111_v14 }
 0x100   :  { %v1776_v35 = vpop.f32.mrf.mxu0 }
 0x101   :  { %v250_v19 = vadd.f32 %v1776_v35, %v106_v18 }
 0x102   :  { %v1217_v36 = vpop.f32.mrf.mxu0 }
 0x103   :  { %v265_v12 = vadd.f32 %v1217_v36, %v121_v9 }
 0x104   :  { %v259_v37 = vpop.f32.mrf.mxu0 }
 0x105   :  { %v260_v17 = vadd.f32 %v259_v37, %v116_v13 }
 0x106   :  { %v1220_v39 = vpop.f32.mrf.mxu0 }
 0x107   :  { %v275_v10 = vadd.f32 %v1220_v39, %v131_v4 }
 0x108   :  { %v269_v40 = vpop.f32.mrf.mxu0 }
 0x109   :  { %v270_v15 = vadd.f32 %v269_v40, %v126_v8 }
 0x10a   :  { %v1223_v41 = vpop.f32.mrf.mxu0 }
 0x10b   :  { %v285_v6 = vadd.f32 %v1223_v41, %v141_v62 }
 0x10c   :  { %v279_v44 = vpop.f32.mrf.mxu0 }
 0x10d   :  { %v280_v11 = vadd.f32 %v279_v44, %v136_v3 }
 0x10e   :  { %v1226_v45 = vpop.f32.mrf.mxu0 }
 0x10f   :  { %v295_v2 = vadd.f32 %v1226_v45, %v151_v54 }
 0x110   :  { %v289_v46 = vpop.f32.mrf.mxu0 }
 0x111   :  { %v290_v7 = vadd.f32 %v289_v46, %v146_v61  ;;  %v1780_v21 = vpop.f32.mrf.mxu1 }
 0x112   :  { %v1229_v49 = vpop.f32.mrf.mxu0 }
 0x113   :  { %v305_v63 = vadd.f32 %v1229_v49, %v161_v48  ;;  %v1784_v22 = vpop.f32.mrf.mxu1 }
 0x114   :  { %v299_v50 = vpop.f32.mrf.mxu0 }
 0x115   :  { %v300_v5 = vadd.f32 %v299_v50, %v156_v52 }
 0x116   :  { %v1232_v51 = vpop.f32.mrf.mxu0  ;;  %v1786_v23 = vpop.f32.mrf.mxu1 }
 0x117   :  { %v315_v53 = vadd.f32 %v1232_v51, %v171_v42 }
 0x118   :  { %v309_v55 = vpop.f32.mrf.mxu0  ;;  %v1788_v24 = vpop.f32.mrf.mxu1 }
 0x119   :  { %427 = vperm.xlu0 %1429, %v315_v53   ;;  %v310_v1 = vadd.f32 %v309_v55, %v166_v47 }
 0x11a   :  { %v1235_v56 = vpop.f32.mrf.mxu0 }
 0x11b   :  { %v325_v57 = vadd.f32 %v1235_v56, %v181_v38  ;;  %v1790_v25 = vpop.f32.mrf.mxu1 }
 0x11c   :  { %v319_v58 = vpop.f32.mrf.mxu0 }
 0x11d   :  { %v320_v60 = vadd.f32 %v319_v58, %v176_v43  ;;  %437 = vperm.xlu0 %1429, %v325_v57   ;;  %v1792_v26 = vpop.f32.mrf.mxu1 }
 0x11f   :  { %432 = vperm.xlu1 %1430, %v320_v60   ;;  %v1794_v27 = vpop.f32.mrf.mxu1 }
 0x121   :  { %417 = vperm.xlu0 %1429, %v305_v63   ;;  %v1796_v28 = vpop.f32.mrf.mxu1 }
 0x123   :  { %422 = vperm.xlu1 %1430, %v310_v1   ;;  %v1282_v29 = vpop.f32.mrf.mxu1 }
 0x125   :  { %407 = vperm.xlu0 %1429, %v295_v2   ;;  %v546_v32 = vpop.f32.mrf.mxu1 }
 0x127   :  { %412 = vperm.xlu1 %1430, %v300_v5   ;;  %v1285_v33 = vpop.f32.mrf.mxu1 }
 0x129   :  { %397 = vperm.xlu0 %1429, %v285_v6   ;;  %v556_v34 = vpop.f32.mrf.mxu1 }
 0x12b   :  { %402 = vperm.xlu1 %1430, %v290_v7   ;;  %v1288_v35 = vpop.f32.mrf.mxu1 }
 0x12d   :  { %387 = vperm.xlu0 %1429, %v275_v10   ;;  %v566_v36 = vpop.f32.mrf.mxu1 }
 0x12f   :  { %392 = vperm.xlu1 %1430, %v280_v11   ;;  %v1291_v37 = vpop.f32.mrf.mxu1 }
 0x131   :  { %377 = vperm.xlu0 %1429, %v265_v12   ;;  %v576_v38 = vpop.f32.mrf.mxu1 }
 0x133   :  { %382 = vperm.xlu1 %1430, %v270_v15   ;;  %v1806_v39 = vpop.f32.mrf.mxu1 }
 0x135   :  { %367 = vperm.xlu0 %1429, %v255_v16   ;;  %v1808_v40 = vpop.f32.mrf.mxu1 }
 0x137   :  { %372 = vperm.xlu1 %1430, %v260_v17   ;;  %v1810_v41 = vpop.f32.mrf.mxu1 }
 0x139   :  { %1431 = vset.pattern.permute.xlu0 %v1507_v20  ;;  %v1812_v42 = vpop.f32.mrf.mxu1 }
 0x13a   :  { %773 = vperm.xlu0 %1431, %v325_v57  }
 0x13b   :  { %362 = vperm.xlu1 %1430, %v250_v19   ;;  %v1814_v43 = vpop.f32.mrf.mxu1 }
 0x13d   :  { %v1816_v44 = vpop.f32.mrf.mxu1 }
 0x13e   :  { %761 = vperm.xlu0 %1431, %v310_v1  }
 0x13f   :  { %1432 = vset.pattern.permute.xlu1 %v1507_v20  ;;  %v1818_v45 = vpop.f32.mrf.mxu1 }
 0x140   :  { %769 = vperm.xlu1 %1432, %v320_v60  }
 0x141   :  { %v1820_v47 = vpop.f32.mrf.mxu1 }
 0x142   :  { %753 = vperm.xlu0 %1431, %v300_v5  }
 0x143   :  { %v1822_v54 = vpop.f32.mrf.mxu1 }
 0x144   :  { %765 = vperm.xlu1 %1432, %v315_v53  }
 0x145   :  { %v1826_v62 = vpop.f32.mrf.mxu1 }
 0x146   :  { %745 = vperm.xlu0 %1431, %v290_v7  }
 0x148   :  { %757 = vperm.xlu1 %1432, %v305_v63  }
 0x14a   :  { %737 = vperm.xlu0 %1431, %v280_v11  }
 0x14c   :  { %749 = vperm.xlu1 %1432, %v295_v2  }
 0x14e   :  { %729 = vperm.xlu0 %1431, %v270_v15  }
 0x150   :  { %741 = vperm.xlu1 %1432, %v285_v6   ;;  %v1830_v6 = vpop.f32.mrf.mxu1 }
 0x152   :  { %721 = vperm.xlu0 %1431, %v260_v17   ;;  %v1835_v13 = vpop.f32.mrf.mxu1 }
 0x154   :  { %733 = vperm.xlu1 %1432, %v275_v10   ;;  %v1379_v20 = vpop.f32.mrf.mxu1 }
 0x156   :  { %713 = vperm.xlu0 %1431, %v250_v19  }
 0x158   :  { %725 = vperm.xlu1 %1432, %v265_v12  }
 0x15a   :  { %1434 = vset.pattern.permute.xlu0 %v1505_v0 }
 0x15b   :  { %941 = vperm.xlu0 %1434, %v938_v31  }
 0x15c   :  { %717 = vperm.xlu1 %1432, %v255_v16  }
 0x160   :  { %1433 = vset.pattern.permute.xlu1 %v1505_v0 }
 0x161   :  { %605 = vperm.xlu1 %1433, %v602_v30  }
 0x194   :  { %v428_v0 = vpop.permute.xlu0 %427 }
 0x195   :  { %v572_v50 = vadd.f32 %v1288_v35, %v428_v0 }
 0x197   :  { %v598_v57 = vmax.f32 %v572_v50, 0.0 }
 0x198   :  { %v438_v46 = vpop.permute.xlu0 %437 }
 0x199   :  { %v582_v48 = vadd.f32 %v1291_v37, %v438_v46 }
 0x19a   :  { %v433_v49 = vpop.permute.xlu1 %432 }
 0x19b   :  { %v600_v51 = vmax.f32 %v582_v48, 0.0  ;;  %v577_v52 = vadd.f32 %v576_v38, %v433_v49 }
 0x19c   :  { %v418_v53 = vpop.permute.xlu0 %417 }
 0x19d   :  { %v599_v55 = vmax.f32 %v577_v52, 0.0  ;;  %1293 = vmatpush3.msra.mxu0 %v600_v51  ;;  %v562_v58 = vadd.f32 %v1285_v33, %v418_v53  ;;  %v601_v51 = vld [vmem:[%s1897_s5] sm:$0x3] }
 0x19e   :  { %1294 = vmatprep.subr.mxu0 %v1506_v59  ;;  %v423_v56 = vpop.permute.xlu1 %422 }
 0x19f   :  { %v567_v60 = vadd.f32 %v566_v36, %v423_v56  ;;  %1295 = vmatpush3.msra.mxu0 %v599_v55  ;;  %v596_v2 = vmax.f32 %v562_v58, 0.0 }
 0x1a0   :  { %v408_v61 = vpop.permute.xlu0 %407  ;;  %1296 = vmatprep.subr.mxu0 %v1506_v59 }
 0x1a1   :  { %v597_v63 = vmax.f32 %v567_v60, 0.0  ;;  %1297 = vmatpush3.msra.mxu0 %v598_v57  ;;  %v552_v3 = vadd.f32 %v1282_v29, %v408_v61 }
 0x1a2   :  { %1298 = vmatprep.subr.mxu0 %v1506_v59  ;;  %v413_v1 = vpop.permute.xlu1 %412 }
 0x1a3   :  { %v557_v4 = vadd.f32 %v556_v34, %v413_v1  ;;  %1299 = vmatpush3.msra.mxu0 %v597_v63  ;;  %v594_v9 = vmax.f32 %v552_v3, 0.0 }
 0x1a4   :  { %v398_v5 = vpop.permute.xlu0 %397  ;;  %1300 = vmatprep.subr.mxu0 %v1506_v59 }
 0x1a5   :  { %v595_v7 = vmax.f32 %v557_v4, 0.0  ;;  %1301 = vmatpush3.msra.mxu0 %v596_v2  ;;  %v542_v10 = vadd.f32 %v1794_v27, %v398_v5 }
 0x1a6   :  { %1302 = vmatprep.subr.mxu0 %v1506_v59  ;;  %v403_v8 = vpop.permute.xlu1 %402 }
 0x1a7   :  { %v547_v11 = vadd.f32 %v546_v32, %v403_v8  ;;  %1303 = vmatpush3.msra.mxu0 %v595_v7  ;;  %v592_v16 = vmax.f32 %v542_v10, 0.0 }
 0x1a8   :  { %v388_v12 = vpop.permute.xlu0 %387  ;;  %1304 = vmatprep.subr.mxu0 %v1506_v59 }
 0x1a9   :  { %v593_v14 = vmax.f32 %v547_v11, 0.0  ;;  %1305 = vmatpush3.msra.mxu0 %v594_v9  ;;  %v532_v17 = vadd.f32 %v1790_v25, %v388_v12  ;;  %v902_v25 = vpop.f32.mrf.mxu1 }
 0x1aa   :  { %1306 = vmatprep.subr.mxu0 %v1506_v59  ;;  %v393_v15 = vpop.permute.xlu1 %392 }
 0x1ab   :  { %v537_v18 = vadd.f32 %v1796_v28, %v393_v15  ;;  %1307 = vmatpush3.msra.mxu0 %v593_v14  ;;  %v590_v30 = vmax.f32 %v532_v17, 0.0 }
 0x1ac   :  { %v378_v19 = vpop.permute.xlu0 %377  ;;  %1308 = vmatprep.subr.mxu0 %v1506_v59 }
 0x1ad   :  { %v591_v27 = vmax.f32 %v537_v18, 0.0  ;;  %1309 = vmatpush3.msra.mxu0 %v592_v16  ;;  %v522_v31 = vadd.f32 %v1786_v23, %v378_v19  ;;  %v1382_v23 = vpop.f32.mrf.mxu1 }
 0x1ae   :  { %1310 = vmatprep.subr.mxu0 %v1506_v59  ;;  %v383_v29 = vpop.permute.xlu1 %382 }
 0x1af   :  { %v527_v32 = vadd.f32 %v1792_v26, %v383_v29  ;;  %1311 = vmatpush3.msra.mxu0 %v591_v27  ;;  %v588_v35 = vmax.f32 %v522_v31, 0.0 }
 0x1b0   :  { %v368_v33 = vpop.permute.xlu0 %367  ;;  %1312 = vmatprep.subr.mxu0 %v1506_v59 }
 0x1b1   :  { %v589_v28 = vmax.f32 %v527_v32, 0.0  ;;  %1313 = vmatpush3.msra.mxu0 %v590_v30  ;;  %v512_v36 = vadd.f32 %v1780_v21, %v368_v33 }
 0x1b2   :  { %1314 = vmatprep.subr.mxu0 %v1506_v59  ;;  %v373_v34 = vpop.permute.xlu1 %372 }
 0x1b3   :  { %v517_v37 = vadd.f32 %v1788_v24, %v373_v34  ;;  %1315 = vmatpush3.msra.mxu0 %v589_v28  ;;  %v586_v46 = vmax.f32 %v512_v36, 0.0  ;;  %v912_v24 = vpop.f32.mrf.mxu1  ;;  %v937_v28 = vld [vmem:[%s1897_s5] sm:$0x3] }
 0x1b4   :  { %1316 = vmatprep.subr.mxu0 %v1506_v59 }
 0x1b5   :  { %v587_v26 = vmax.f32 %v517_v37, 0.0  ;;  %v774_v38 = vpop.permute.xlu0 %773  ;;  %1317 = vmatpush3.msra.mxu0 %v588_v35 }
 0x1b6   :  { %1318 = vmatprep.subr.mxu0 %v1506_v59  ;;  %v363_v0 = vpop.permute.xlu1 %362  ;;  %v918_v48 = vadd.f32 %v1382_v23, %v774_v38 }
 0x1b7   :  { %v507_v49 = vadd.f32 %v1784_v22, %v363_v0  ;;  %1319 = vmatpush3.msra.mxu0 %v587_v26 }
 0x1b8   :  { %1320 = vmatprep.subr.mxu0 %v1506_v59  ;;  %v936_v52 = vmax.f32 %v918_v48, 0.0 }
 0x1b9   :  { %v585_v21 = vmax.f32 %v507_v49, 0.0  ;;  %v762_v50 = vpop.permute.xlu0 %761  ;;  %1321 = vmatpush3.msra.mxu0 %v586_v46 }
 0x1ba   :  { %1322 = vmatprep.subr.mxu0 %v1506_v59  ;;  %v903_v58 = vadd.f32 %v902_v25, %v762_v50 }
 0x1bb   :  { %1323 = vmatpush3.msra.mxu0 %v585_v21  ;;  %v770_v53 = vpop.permute.xlu1 %769 }
 0x1bc   :  { %v913_v55 = vadd.f32 %v912_v24, %v770_v53  ;;  %1383 = vmatprep.subr.mxu0 %v1506_v59  ;;  %1325 = vmatmul.mubr.f32.vlgmr.msra.gmra.mxu0 %v601_v51  ;;  %v933_v2 = vmax.f32 %v903_v58, 0.0 }
 0x1bd   :  { %v754_v22 = vpop.permute.xlu0 %753  ;;  %1384 = vmatpush3.msra.mxu0 %v936_v52  ;;  %1415 = vmatprep.mubr.msk.f32.mxu0 %vm1508_vm0, %v1506_v59 }
 0x1be   :  { %v935_v56 = vmax.f32 %v913_v55, 0.0  ;;  %1385 = vmatprep.subr.mxu0 %v1506_v59  ;;  %v893_v3 = vadd.f32 %v1835_v13, %v754_v22 }
 0x1bf   :  { %v766_v57 = vpop.permute.xlu1 %765 }
 0x1c0   :  { %v908_v60 = vadd.f32 %v1379_v20, %v766_v57  ;;  %1386 = vmatpush3.msra.mxu0 %v935_v56  ;;  %v931_v9 = vmax.f32 %v893_v3, 0.0 }
 0x1c1   :  { %v746_v61 = vpop.permute.xlu0 %745  ;;  %1387 = vmatprep.subr.mxu0 %v1506_v59 }
 0x1c2   :  { %v934_v63 = vmax.f32 %v908_v60, 0.0  ;;  %v883_v10 = vadd.f32 %v1826_v62, %v746_v61 }
 0x1c3   :  { %v758_v1 = vpop.permute.xlu1 %757 }
 0x1c4   :  { %v898_v4 = vadd.f32 %v1830_v6, %v758_v1  ;;  %1388 = vmatpush3.msra.mxu0 %v934_v63  ;;  %v929_v14 = vmax.f32 %v883_v10, 0.0 }
 0x1c5   :  { %v738_v5 = vpop.permute.xlu0 %737  ;;  %1389 = vmatprep.subr.mxu0 %v1506_v59 }
 0x1c6   :  { %v932_v7 = vmax.f32 %v898_v4, 0.0  ;;  %1390 = vmatpush3.msra.mxu0 %v933_v2  ;;  %v873_v15 = vadd.f32 %v1820_v47, %v738_v5 }
 0x1c7   :  { %1391 = vmatprep.subr.mxu0 %v1506_v59  ;;  %v750_v8 = vpop.permute.xlu1 %749 }
 0x1c8   :  { %v888_v11 = vadd.f32 %v1822_v54, %v750_v8  ;;  %1392 = vmatpush3.msra.mxu0 %v932_v7  ;;  %v927_v18 = vmax.f32 %v873_v15, 0.0 }
 0x1c9   :  { %v730_v12 = vpop.permute.xlu0 %729  ;;  %1393 = vmatprep.subr.mxu0 %v1506_v59 }
 0x1ca   :  { %v930_v13 = vmax.f32 %v888_v11, 0.0  ;;  %1394 = vmatpush3.msra.mxu0 %v931_v9  ;;  %v863_v19 = vadd.f32 %v1816_v44, %v730_v12 }
 0x1cb   :  { %1395 = vmatprep.subr.mxu0 %v1506_v59  ;;  %v742_v6 = vpop.permute.xlu1 %741 }
 0x1cc   :  { %v878_v16 = vadd.f32 %v1818_v45, %v742_v6  ;;  %1396 = vmatpush3.msra.mxu0 %v930_v13  ;;  %v925_v27 = vmax.f32 %v863_v19, 0.0 }
 0x1cd   :  { %1397 = vmatprep.subr.mxu0 %v1506_v59  ;;  %v722_v54 = vpop.permute.xlu0 %721 }
 0x1ce   :  { %v928_v62 = vmax.f32 %v878_v16, 0.0  ;;  %1398 = vmatpush3.msra.mxu0 %v929_v14  ;;  %v853_v29 = vadd.f32 %v1812_v42, %v722_v54 }
 0x1cf   :  { %1399 = vmatprep.subr.mxu0 %v1506_v59  ;;  %v734_v17 = vpop.permute.xlu1 %733 }
 0x1d0   :  { %v868_v20 = vadd.f32 %v1814_v43, %v734_v17  ;;  %1400 = vmatpush3.msra.mxu0 %v928_v62  ;;  %v923_v32 = vmax.f32 %v853_v29, 0.0 }
 0x1d1   :  { %1401 = vmatprep.subr.mxu0 %v1506_v59  ;;  %v714_v31 = vpop.permute.xlu0 %713 }
 0x1d2   :  { %v926_v47 = vmax.f32 %v868_v20, 0.0  ;;  %1402 = vmatpush3.msra.mxu0 %v927_v18  ;;  %v843_v33 = vadd.f32 %v1808_v40, %v714_v31 }
 0x1d3   :  { %1403 = vmatprep.subr.mxu0 %v1506_v59  ;;  %v726_v45 = vpop.permute.xlu1 %725 }
 0x1d4   :  { %v858_v30 = vadd.f32 %v1810_v41, %v726_v45  ;;  %1404 = vmatpush3.msra.mxu0 %v926_v47  ;;  %v921_v41 = vmax.f32 %v843_v33, 0.0 }
 0x1d5   :  { %1405 = vmatprep.subr.mxu0 %v1506_v59 }
 0x1d6   :  { %v924_v44 = vmax.f32 %v858_v30, 0.0  ;;  %1406 = vmatpush3.msra.mxu0 %v925_v27  ;;  %v942_v36 = vpop.permute.xlu0 %941 }
 0x1d7   :  { %1407 = vmatprep.subr.mxu0 %v1506_v59  ;;  %v718_v43 = vpop.permute.xlu1 %717 }
 0x1d8   :  { %v848_v25 = vadd.f32 %v1806_v39, %v718_v43  ;;  %1408 = vmatpush3.msra.mxu0 %v924_v44 }
 0x1d9   :  { %1409 = vmatprep.subr.mxu0 %v1506_v59 }
 0x1da   :  { %v922_v42 = vmax.f32 %v848_v25, 0.0  ;;  %1410 = vmatpush3.msra.mxu0 %v923_v32 }
 0x1db   :  { %1411 = vmatprep.subr.mxu0 %v1506_v59 }
 0x1dc   :  { %1412 = vmatpush3.msra.mxu0 %v922_v42  ;;  %v606_v40 = vpop.permute.xlu1 %605 }
 0x1dd   :  { %1413 = vmatprep.subr.mxu0 %v1506_v59 }
 0x1de   :  { %1414 = vmatpush3.msra.mxu0 %v921_v41 }
 0x1df   :  { %1416 = vmatmul.mubr.f32.vlgmr.msra.gmra.mxu0 %v937_v28 }
 0x27c   :  { %v674_v34 = vpop.f32.mrf.mxu0 }
 0x27d   :  { %v675_v39 = vadd.f32 %v674_v34, %v606_v40 }
 0x27e   :  { %v1326_v35 = vpop.f32.mrf.mxu0 }
 0x27f   :  { %678 = vst [vmem:[#allocation7] sm:$0x3] %v675_v39 }
 0x29f   :  { %v1010_v37 = vpop.f32.mrf.mxu0 }
 0x2a0   :  { %v1011_v23 = vadd.f32 %v1010_v37, %v942_v36 }
 0x2a1   :  { %v1417_v26 = vpop.f32.mrf.mxu0 }
 0x2a2   :  { %1015 = vst [vmem:[#allocation7 + $0x2] sm:$0x3] %v1011_v23 }
 0x2a3   :  { %1486 = shalt.err (!%p1483_p0)
}
 0x2a4   :  { %s1510_s5 = smov 32   ;;  %s1511_s18 = smov 2  }
 0x2a5   :  { %1027 = dma.vmem_to_hbm [thread:$0]  %s1022_s16, 64, %s1899_s7, [#allocation4], %s1510_s5, %s1510_s5, %s1511_s18  }
 0x2a6   :  { %1499 = dma.done.wait [#allocation4], 64  }
 0x2a7   :  { %1500 = vsyncadd [#allocation4], 4294967232 }
 0x2a8   :  { %1031 = vsyncpa [#allocation3], 1 }
 0x2a9   :  { %1032 = vsyncpa [#allocation6], 1 }
 0x2aa   :  { %1033 = vsyncpa [#allocation4], 1 }

</bundles_post_ra>
